<compile_context>
chip_gen: v5e
topology: v5e:2x2
jax: 0.10.0
libtpu: 0.0.40
codegen_flags: <defaults>
</compile_context>

<pallas_src>
import jax
import jax.numpy as jnp
from jax.experimental import pallas as pl
from jax.experimental.pallas import tpu as pltpu


def _round_up(n, m):
    return ((n + m - 1) // m) * m


def dqn_kernel(x_ref, w1_ref, b1_ref, w2_ref, b2_ref, w3_ref, b3_ref, o_ref):
    """One (TM, in_dim) batch tile through the 3-layer MLP.
    Matmul inputs are in the weights' dtype (f32 or bf16, x pre-cast in the
    wrapper); accumulation and all bias/ReLU math are f32."""
    cdt = w1_ref.dtype
    # fc1 + relu
    h1 = jnp.dot(x_ref[...], w1_ref[...], preferred_element_type=jnp.float32)
    h1 = jnp.maximum(h1 + b1_ref[...], 0.0)
    # fc2 + relu
    h2 = jnp.dot(h1.astype(cdt), w2_ref[...], preferred_element_type=jnp.float32)
    h2 = jnp.maximum(h2 + b2_ref[...], 0.0)
    # fc3 (no activation); output columns are padded to a multiple of 8
    out = jnp.dot(h2.astype(cdt), w3_ref[...], preferred_element_type=jnp.float32)
    o_ref[...] = (out + b3_ref[...]).astype(o_ref.dtype)
    # TODO(synk): optional fused max/argmax-over-actions epilogue (would shrink
    # the output to (TM, 1)) for per-step action selection; not part of the
    # module's forward, so not emitted here.


def init_dqn_params(key, input_dim, output_dim, hidden=128):
    """Deterministic init matching nn.Linear's U(-1/sqrt(fan_in), 1/sqrt(fan_in))."""
    ks = jax.random.split(key, 6)

    def linear(kw, kb, fan_in, fan_out):
        bound = 1.0 / jnp.sqrt(fan_in)
        W = jax.random.uniform(kw, (fan_in, fan_out), jnp.float32, -bound, bound)
        b = jax.random.uniform(kb, (1, fan_out), jnp.float32, -bound, bound)
        return W, b

    W1, b1 = linear(ks[0], ks[1], input_dim, hidden)
    W2, b2 = linear(ks[2], ks[3], hidden, hidden)
    W3, b3 = linear(ks[4], ks[5], hidden, output_dim)
    return {"W1": W1, "b1": b1, "W2": W2, "b2": b2, "W3": W3, "b3": b3}


def prepare_dqn_params(params, *, weights_dtype=None):
    """One-time weight prep, hoisted out of the per-call forward path:
      * pad fc3 columns to a multiple of 8 (small store slab, sliced off later),
      * optionally cast matmul weights to a narrower dtype (bf16 on v6e/v7x);
        biases stay f32 so the VPU bias-add/ReLU path is v5e-safe.
    Note for sub-bf16 quantization: v7x's MXU has no int8/int4 path (fp8 only),
    so plan an fp8 (e4m3) weight variant there rather than reusing int8."""
    w1, b1, w2, b2, w3, b3 = (params[k] for k in ("W1", "b1", "W2", "b2", "W3", "b3"))
    out_dim = w3.shape[1]
    out_p = _round_up(out_dim, 8)
    w3p = jnp.pad(w3, ((0, 0), (0, out_p - out_dim)))
    b3p = jnp.pad(b3, ((0, 0), (0, out_p - out_dim)))
    if weights_dtype is not None:
        w1 = w1.astype(weights_dtype)
        w2 = w2.astype(weights_dtype)
        w3p = w3p.astype(weights_dtype)
    return {"W1": w1, "b1": b1, "W2": w2, "b2": b2, "W3": w3p, "b3": b3p}


def dqn_forward(x, prep, *, out_dim=None, tm_cap=512):
    """x: (B, input_dim) f32.  prep: output of prepare_dqn_params().
    out_dim: true number of actions (padded columns are sliced off).
    tm_cap: upper bound on rows per grid step; ~512 amortizes per-step cost
    without spilling the f32 h1/h2 live values."""
    w1, b1, w2, b2, w3, b3 = (prep[k] for k in ("W1", "b1", "W2", "b2", "W3", "b3"))
    B, in_dim = x.shape
    hidden = w1.shape[1]
    out_p = w3.shape[1]
    if out_dim is None:
        out_dim = out_p

    # ---- adaptive batch tile ---------------------------------------------
    # Sublane alignment: 8 rows for f32 tiles, 16 for bf16, 32 for 8-bit.
    itemsize = jnp.dtype(w1.dtype).itemsize
    align = 8 * max(1, 4 // itemsize)
    b_al = _round_up(max(B, 1), align)
    if b_al > align:
        # At most half the batch per tile -> >= 2 grid steps, so the
        # "parallel" axis can shard across v7x's two TensorCores.
        tm = min(tm_cap, _round_up((b_al + 1) // 2, align))
    else:
        tm = align
    Bp = _round_up(B, tm)
    if Bp != B:
        x = jnp.pad(x, ((0, Bp - B), (0, 0)))

    # bf16 weight path: cast x once here (it is only ever a matmul input).
    if x.dtype != w1.dtype:
        x = x.astype(w1.dtype)

    grid = (Bp // tm,)

    out_padded = pl.pallas_call(
        dqn_kernel,
        out_shape=jax.ShapeDtypeStruct((Bp, out_p), jnp.float32),
        grid=grid,
        in_specs=[
            # batch-tiled activation
            pl.BlockSpec((tm, in_dim), lambda i: (i, 0)),
            # resident weights / biases (constant block -> no re-copy per step)
            pl.BlockSpec((in_dim, hidden), lambda i: (0, 0)),
            pl.BlockSpec((1, hidden), lambda i: (0, 0)),
            pl.BlockSpec((hidden, hidden), lambda i: (0, 0)),
            pl.BlockSpec((1, hidden), lambda i: (0, 0)),
            pl.BlockSpec((hidden, out_p), lambda i: (0, 0)),
            pl.BlockSpec((1, out_p), lambda i: (0, 0)),
        ],
        out_specs=pl.BlockSpec((tm, out_p), lambda i: (i, 0)),
        compiler_params=pltpu.CompilerParams(
            dimension_semantics=("parallel",),
            vmem_limit_bytes=8 << 20,
        ),
    )(x, w1, b1, w2, b2, w3, b3)

    # strip batch padding and fc3 column padding
    return out_padded[:B, :out_dim]


def dqn_reference(x, params):
    h1 = jnp.maximum(x @ params["W1"] + params["b1"], 0.0)
    h2 = jnp.maximum(h1 @ params["W2"] + params["b2"], 0.0)
    return h2 @ params["W3"] + params["b3"]


if __name__ == "__main__":
    key = jax.random.PRNGKey(0)
    k_x, k_p = jax.random.split(key)

    batch, input_dim, output_dim = 32, 16, 4     # small DQN inference batch
    x = jax.random.normal(k_x, (batch, input_dim), dtype=jnp.float32)
    params = init_dqn_params(k_p, input_dim, output_dim)
    ref = dqn_reference(x, params)

    # f32 weight path: exact match vs pure-JAX reference (grid=(2,), tm=16)
    prep_f32 = prepare_dqn_params(params)
    out = jax.block_until_ready(dqn_forward(x, prep_f32, out_dim=output_dim))
    assert out.shape == (batch, output_dim)
    assert jnp.allclose(out, ref, atol=1e-5, rtol=1e-5), "f32 mismatch vs reference"

    # ragged batch (not a multiple of the tile): padded in the wrapper
    out_tail = jax.block_until_ready(dqn_forward(x[:7], prep_f32, out_dim=output_dim))
    assert jnp.allclose(out_tail, ref[:7], atol=1e-5, rtol=1e-5), "ragged-batch mismatch"

    # bf16-weight path (v6e/v7x MXU friendly); x cast once in the wrapper,
    # accumulation and bias/ReLU math stay f32
    prep_bf16 = prepare_dqn_params(params, weights_dtype=jnp.bfloat16)
    out_bf16 = jax.block_until_ready(dqn_forward(x, prep_bf16, out_dim=output_dim))
    assert jnp.allclose(out_bf16, ref, atol=5e-2, rtol=5e-2), "bf16 mismatch"

    print("KERNEL_OK")
</pallas_src>

<mosaic_0001>
module attributes {stable_mosaic.version = 11 : i64} {
  func.func @dqn_kernel(%arg0: i32, %arg1: memref<16x16xf32, #tpu.memory_space<vmem>>, %arg2: memref<16x128xf32, #tpu.memory_space<vmem>>, %arg3: memref<1x128xf32, #tpu.memory_space<vmem>>, %arg4: memref<128x128xf32, #tpu.memory_space<vmem>>, %arg5: memref<1x128xf32, #tpu.memory_space<vmem>>, %arg6: memref<128x8xf32, #tpu.memory_space<vmem>>, %arg7: memref<1x8xf32, #tpu.memory_space<vmem>>, %arg8: memref<16x8xf32, #tpu.memory_space<vmem>>) attributes {dimension_semantics = [#tpu.dimension_semantics<parallel>], iteration_bounds = array<i64: 2>, scalar_prefetch = 0 : i64, scratch_operands = 0 : i64, tpu.core_type = #tpu.core_type<tc>, window_params = [{transform_indices = @transform_0, window_bounds = array<i64: 16, 16>}, {pipeline_mode = #tpu.pipeline_mode<synchronous>, transform_indices = @transform_1, window_bounds = array<i64: 16, 128>}, {pipeline_mode = #tpu.pipeline_mode<synchronous>, transform_indices = @transform_2, window_bounds = array<i64: 1, 128>}, {pipeline_mode = #tpu.pipeline_mode<synchronous>, transform_indices = @transform_3, window_bounds = array<i64: 128, 128>}, {pipeline_mode = #tpu.pipeline_mode<synchronous>, transform_indices = @transform_4, window_bounds = array<i64: 1, 128>}, {pipeline_mode = #tpu.pipeline_mode<synchronous>, transform_indices = @transform_5, window_bounds = array<i64: 128, 8>}, {pipeline_mode = #tpu.pipeline_mode<synchronous>, transform_indices = @transform_6, window_bounds = array<i64: 1, 8>}, {transform_indices = @transform_7, window_bounds = array<i64: 16, 8>}]} {
    %c0 = arith.constant 0 : index
    %c0_0 = arith.constant 0 : index
    %0 = vector.load %arg1[%c0, %c0_0] : memref<16x16xf32, #tpu.memory_space<vmem>>, vector<16x16xf32>
    %c0_1 = arith.constant 0 : index
    %c0_2 = arith.constant 0 : index
    %1 = vector.load %arg2[%c0_1, %c0_2] : memref<16x128xf32, #tpu.memory_space<vmem>>, vector<16x128xf32>
    %cst = arith.constant dense<0.000000e+00> : vector<16x128xf32>
    %2 = tpu.matmul %0, %1, %cst {dimension_numbers = #tpu.dot_dimension_numbers<[1], [0], [0], [1], [0, 0, 1, 1], [], []>} : vector<16x16xf32>, vector<16x128xf32>, vector<16x128xf32> -> vector<16x128xf32>
    %c0_3 = arith.constant 0 : index
    %c0_4 = arith.constant 0 : index
    %3 = vector.load %arg3[%c0_3, %c0_4] : memref<1x128xf32, #tpu.memory_space<vmem>>, vector<1x128xf32>
    %4 = vector.broadcast %3 : vector<1x128xf32> to vector<16x128xf32>
    %5 = arith.addf %2, %4 : vector<16x128xf32>
    %cst_5 = arith.constant 0.000000e+00 : f32
    %6 = vector.broadcast %cst_5 : f32 to vector<16x128xf32>
    %7 = arith.maximumf %5, %6 : vector<16x128xf32>
    %c0_6 = arith.constant 0 : index
    %c0_7 = arith.constant 0 : index
    %8 = vector.load %arg4[%c0_6, %c0_7] : memref<128x128xf32, #tpu.memory_space<vmem>>, vector<128x128xf32>
    %cst_8 = arith.constant dense<0.000000e+00> : vector<16x128xf32>
    %9 = tpu.matmul %7, %8, %cst_8 {dimension_numbers = #tpu.dot_dimension_numbers<[1], [0], [0], [1], [0, 0, 1, 1], [], []>} : vector<16x128xf32>, vector<128x128xf32>, vector<16x128xf32> -> vector<16x128xf32>
    %c0_9 = arith.constant 0 : index
    %c0_10 = arith.constant 0 : index
    %10 = vector.load %arg5[%c0_9, %c0_10] : memref<1x128xf32, #tpu.memory_space<vmem>>, vector<1x128xf32>
    %11 = vector.broadcast %10 : vector<1x128xf32> to vector<16x128xf32>
    %12 = arith.addf %9, %11 : vector<16x128xf32>
    %cst_11 = arith.constant 0.000000e+00 : f32
    %13 = vector.broadcast %cst_11 : f32 to vector<16x128xf32>
    %14 = arith.maximumf %12, %13 : vector<16x128xf32>
    %c0_12 = arith.constant 0 : index
    %c0_13 = arith.constant 0 : index
    %15 = vector.load %arg6[%c0_12, %c0_13] : memref<128x8xf32, #tpu.memory_space<vmem>>, vector<128x8xf32>
    %cst_14 = arith.constant dense<0.000000e+00> : vector<16x8xf32>
    %16 = tpu.matmul %14, %15, %cst_14 {dimension_numbers = #tpu.dot_dimension_numbers<[1], [0], [0], [1], [0, 0, 1, 1], [], []>} : vector<16x128xf32>, vector<128x8xf32>, vector<16x8xf32> -> vector<16x8xf32>
    %c0_15 = arith.constant 0 : index
    %c0_16 = arith.constant 0 : index
    %17 = vector.load %arg7[%c0_15, %c0_16] : memref<1x8xf32, #tpu.memory_space<vmem>>, vector<1x8xf32>
    %18 = vector.broadcast %17 : vector<1x8xf32> to vector<16x8xf32>
    %19 = arith.addf %16, %18 : vector<16x8xf32>
    %c0_17 = arith.constant 0 : index
    %c0_18 = arith.constant 0 : index
    %20 = vector.load %arg8[%c0_17, %c0_18] : memref<16x8xf32, #tpu.memory_space<vmem>>, vector<16x8xf32>
    tpu.vector_store %arg8[%c0_17, %c0_18], %19 {strides = array<i32>} : memref<16x8xf32, #tpu.memory_space<vmem>>, vector<16x8xf32>,
    return
  }
  func.func @transform_0(%arg0: i32) -> (i32, i32) {
    %c0_i32 = arith.constant 0 : i32
    %c0_i32_0 = arith.constant 0 : i32
    return %arg0, %c0_i32 : i32, i32
  }
  func.func @transform_1(%arg0: i32) -> (i32, i32) {
    %c0_i32 = arith.constant 0 : i32
    %c0_i32_0 = arith.constant 0 : i32
    %c0_i32_1 = arith.constant 0 : i32
    return %c0_i32, %c0_i32_0 : i32, i32
  }
  func.func @transform_2(%arg0: i32) -> (i32, i32) {
    %c0_i32 = arith.constant 0 : i32
    %c0_i32_0 = arith.constant 0 : i32
    %c0_i32_1 = arith.constant 0 : i32
    return %c0_i32, %c0_i32_0 : i32, i32
  }
  func.func @transform_3(%arg0: i32) -> (i32, i32) {
    %c0_i32 = arith.constant 0 : i32
    %c0_i32_0 = arith.constant 0 : i32
    %c0_i32_1 = arith.constant 0 : i32
    return %c0_i32, %c0_i32_0 : i32, i32
  }
  func.func @transform_4(%arg0: i32) -> (i32, i32) {
    %c0_i32 = arith.constant 0 : i32
    %c0_i32_0 = arith.constant 0 : i32
    %c0_i32_1 = arith.constant 0 : i32
    return %c0_i32, %c0_i32_0 : i32, i32
  }
  func.func @transform_5(%arg0: i32) -> (i32, i32) {
    %c0_i32 = arith.constant 0 : i32
    %c0_i32_0 = arith.constant 0 : i32
    %c0_i32_1 = arith.constant 0 : i32
    return %c0_i32, %c0_i32_0 : i32, i32
  }
  func.func @transform_6(%arg0: i32) -> (i32, i32) {
    %c0_i32 = arith.constant 0 : i32
    %c0_i32_0 = arith.constant 0 : i32
    %c0_i32_1 = arith.constant 0 : i32
    return %c0_i32, %c0_i32_0 : i32, i32
  }
  func.func @transform_7(%arg0: i32) -> (i32, i32) {
    %c0_i32 = arith.constant 0 : i32
    %c0_i32_0 = arith.constant 0 : i32
    return %arg0, %c0_i32 : i32, i32
  }
}

</mosaic_0001>

<bundles_post_ra>
// kernel: tpu_custom_call.1
= control target key start
LH: loop header
LB: loop body
LE: loop exit
PB: predicated region body
PF: predicated region fallthrough
CT: control target
= control target key end

     0   :  { %s573_s24 = smov 0   ;;  %s710_s0 = inlined_call_operand.vmem [shape: f32[32,16], index: 0, kind: input, shape index: {}]   ;;  %s711_s1 = inlined_call_operand.vmem [shape: f32[16,128], index: 1, kind: input, shape index: {}]   ;;  %s712_s2 = inlined_call_operand.vmem [shape: f32[1,128], index: 2, kind: input, shape index: {}]   ;;  %s713_s3 = inlined_call_operand.vmem [shape: f32[128,128], index: 3, kind: input, shape index: {}]   ;;  %s714_s4 = inlined_call_operand.vmem [shape: f32[1,128], index: 4, kind: input, shape index: {}]   ;;  %s715_s5 = inlined_call_operand.vmem [shape: f32[128,8], index: 5, kind: input, shape index: {}]   ;;  %s716_s6 = inlined_call_operand.vmem [shape: f32[1,8], index: 6, kind: input, shape index: {}]   ;;  %s717_s7 = inlined_call_operand.vmem [shape: f32[32,8], index: 7, kind: output, shape index: {}]  }
   0x1 LB: > { %s469_s25 = sadd.s32 4294967295, %s531_s24   ;;  %p473_p0 = scmp.ge.s32.totalorder %s531_s24, 1  ;;  %s531_s24 = sphi %s573_s24, %s17_s24  }
   0x2   : > { %p238_p1 = scmp.lt.s32.totalorder %s531_s24, 3 }
   0x4   : > { %p239_p2 = pnand %p473_p0, %p238_p1 }
   0x5   : > { %s474_s30 = sshll.u32 (!%p239_p2), %s469_s25, 1 }
   0x6   : > { %242 = sbr.rel (%p239_p2) target bundleno = 424 (0x1a8), region = 48  ;;  %p271_p3 = scmp.lt.s32.totalorder (!%p239_p2), %s474_s30, 3 }
   0xb   : > { %v285_v0 = vld [vmem:[%s711_s1 + $0x8] sm:$0xff]  ;;  %v284_v1 = vld [vmem:[%s711_s1] sm:$0xff]  ;;  %v337_v2 = vld [vmem:[%s713_s3 + $0x78] sm:$0xff]  ;;  %s719_s30 = smov (!%p271_p3, %s474_s30), 3  ;;  %vm290_vm0 = vcmask 130048   ;;  %vm410_vm1 = vcmask 64512  }
   0xc   : > { %311 = vmatpush.msra.mxu0 %v285_v0  ;;  %342 = vmatpush.msra.mxu1 %v337_v2  ;;  %v336_v3 = vld [vmem:[%s713_s3 + $0x70] sm:$0xff]  ;;  %v335_v4 = vld [vmem:[%s713_s3 + $0x68] sm:$0xff]  ;;  %v334_v5 = vld [vmem:[%s713_s3 + $0x60] sm:$0xff]  ;;  %s475_s16 = sshll.u32 %s719_s30, 3 }
   0xd   : > { %482 = vmatpush.msra.mxu3 %v337_v2  ;;  %s274_s19 = scalar_lea.vmem %s710_s0, %s475_s16  ;;  %v333_v6 = vld [vmem:[%s713_s3 + $0x58] sm:$0xff]  ;;  %v332_v8 = vld [vmem:[%s713_s3 + $0x50] sm:$0xff]  ;;  %v331_v9 = vld [vmem:[%s713_s3 + $0x48] sm:$0xff]  ;;  %s280_s25 = scalar_lea.vmem %s717_s7, %s475_s16 }
   0xe   : > { %312 = vmatpush.msra.mxu0 %v284_v1  ;;  %343 = vmatpush.msra.mxu1 %v336_v3  ;;  %v282_v7 = vld [vmem:[%s274_s19] sm:$0xff]  ;;  %v283_v11 = vld [vmem:[%s274_s19 + $0x8] sm:$0xff]  ;;  %v329_v12 = vld [vmem:[%s713_s3 + $0x38] sm:$0xff] }
   0xf   : > { %483 = vmatpush.msra.mxu3 %v336_v3  ;;  %478 = vmatmul.msk.f32.vlgmr.msra.gmra.mxu0 %vm290_vm0, %v282_v7  ;;  %v330_v10 = vld [vmem:[%s713_s3 + $0x40] sm:$0xff]  ;;  %v328_v13 = vld [vmem:[%s713_s3 + $0x30] sm:$0xff]  ;;  %v327_v14 = vld [vmem:[%s713_s3 + $0x28] sm:$0xff] }
  0x10   : > { %344 = vmatpush.msra.mxu1 %v335_v4  ;;  %v326_v15 = vld [vmem:[%s713_s3 + $0x20] sm:$0xff]  ;;  %v325_v16 = vld [vmem:[%s713_s3 + $0x18] sm:$0xff]  ;;  %v324_v17 = vld [vmem:[%s713_s3 + $0x10] sm:$0xff] }
  0x11   : > { %484 = vmatpush.msra.mxu3 %v335_v4  ;;  %v323_v18 = vld [vmem:[%s713_s3 + $0x8] sm:$0xff]  ;;  %v322_v19 = vld [vmem:[%s713_s3] sm:$0xff]  ;;  %v382_v20 = vld [vmem:[%s715_s5 + $0x78] sm:$0xff] }
  0x12   : > { %345 = vmatpush.msra.mxu1 %v334_v5  ;;  %v381_v21 = vld [vmem:[%s715_s5 + $0x70] sm:$0xff]  ;;  %387 = vmatpush.msrb.mxu0 %v382_v20  ;;  %v380_v22 = vld [vmem:[%s715_s5 + $0x68] sm:$0xff]  ;;  %v379_v23 = vld [vmem:[%s715_s5 + $0x60] sm:$0xff] }
  0x13   : > { %485 = vmatpush.msra.mxu3 %v334_v5  ;;  %498 = vmatpush.msra.mxu2 %v382_v20  ;;  %v378_v24 = vld [vmem:[%s715_s5 + $0x58] sm:$0xff]  ;;  %v377_v25 = vld [vmem:[%s715_s5 + $0x50] sm:$0xff]  ;;  %v376_v26 = vld [vmem:[%s715_s5 + $0x48] sm:$0xff] }
  0x14   : > { %346 = vmatpush.msra.mxu1 %v333_v6  ;;  %388 = vmatpush.msrb.mxu0 %v381_v21  ;;  %v375_v27 = vld [vmem:[%s715_s5 + $0x40] sm:$0xff]  ;;  %v374_v28 = vld [vmem:[%s715_s5 + $0x38] sm:$0xff]  ;;  %v373_v30 = vld [vmem:[%s715_s5 + $0x30] sm:$0xff] }
  0x15   : > { %486 = vmatpush.msra.mxu3 %v333_v6  ;;  %499 = vmatpush.msra.mxu2 %v381_v21  ;;  %v522_v29 = vld [vmem:[%s712_s2] ss:$0 sm:$0xff]  ;;  %v372_v31 = vld [vmem:[%s715_s5 + $0x28] sm:$0xff]  ;;  %v370_v36 = vld [vmem:[%s715_s5 + $0x18] sm:$0xff] }
  0x16   : > { %347 = vmatpush.msra.mxu1 %v332_v8  ;;  %389 = vmatpush.msrb.mxu0 %v380_v22  ;;  %v371_v34 = vld [vmem:[%s715_s5 + $0x20] sm:$0xff]  ;;  %v369_v40 = vld [vmem:[%s715_s5 + $0x10] sm:$0xff]  ;;  %v368_v41 = vld [vmem:[%s715_s5 + $0x8] sm:$0xff] }
  0x17   : > { %487 = vmatpush.msra.mxu3 %v332_v8  ;;  %479 = vmatmul.msk.f32.gmra.mxu0 %vm290_vm0, %v283_v11  ;;  %v367_v42 = vld [vmem:[%s715_s5] sm:$0xff] }
  0x18   : > { %348 = vmatpush.msra.mxu1 %v331_v9  ;;  %500 = vmatpush.msra.mxu2 %v380_v22  ;;  %v523_v43 = vld [vmem:[%s714_s4] ss:$0 sm:$0xff] }
  0x19   : > { %488 = vmatpush.msra.mxu3 %v331_v9  ;;  %390 = vmatpush.msrb.mxu0 %v379_v23  ;;  %v524_v50 = vld [vmem:[%s716_s6] ss:$0 sm:$0xff] }
  0x1a   : > { %349 = vmatpush.msra.mxu1 %v330_v10  ;;  %501 = vmatpush.msra.mxu2 %v379_v23 }
  0x1b   : > { %489 = vmatpush.msra.mxu3 %v330_v10  ;;  %391 = vmatpush.msrb.mxu0 %v378_v24 }
  0x1c   : > { %350 = vmatpush.msra.mxu1 %v329_v12  ;;  %502 = vmatpush.msra.mxu2 %v378_v24 }
  0x1d   : > { %490 = vmatpush.msra.mxu3 %v329_v12  ;;  %392 = vmatpush.msrb.mxu0 %v377_v25 }
  0x1e   : > { %351 = vmatpush.msra.mxu1 %v328_v13  ;;  %503 = vmatpush.msra.mxu2 %v377_v25 }
  0x1f   : > { %491 = vmatpush.msra.mxu3 %v328_v13  ;;  %393 = vmatpush.msrb.mxu0 %v376_v26 }
  0x20   : > { %352 = vmatpush.msra.mxu1 %v327_v14  ;;  %504 = vmatpush.msra.mxu2 %v376_v26 }
  0x21   : > { %492 = vmatpush.msra.mxu3 %v327_v14  ;;  %394 = vmatpush.msrb.mxu0 %v375_v27 }
  0x22   : > { %353 = vmatpush.msra.mxu1 %v326_v15  ;;  %505 = vmatpush.msra.mxu2 %v375_v27 }
  0x23   : > { %493 = vmatpush.msra.mxu3 %v326_v15  ;;  %395 = vmatpush.msrb.mxu0 %v374_v28 }
  0x24   : > { %354 = vmatpush.msra.mxu1 %v325_v16  ;;  %506 = vmatpush.msra.mxu2 %v374_v28 }
  0x25   : > { %494 = vmatpush.msra.mxu3 %v325_v16  ;;  %396 = vmatpush.msrb.mxu0 %v373_v30 }
  0x26   : > { %355 = vmatpush.msra.mxu1 %v324_v17  ;;  %507 = vmatpush.msra.mxu2 %v373_v30 }
  0x27   : > { %495 = vmatpush.msra.mxu3 %v324_v17  ;;  %397 = vmatpush.msrb.mxu0 %v372_v31 }
  0x28   : > { %356 = vmatpush.msra.mxu1 %v323_v18  ;;  %508 = vmatpush.msra.mxu2 %v372_v31 }
  0x29   : > { %496 = vmatpush.msra.mxu3 %v323_v18  ;;  %398 = vmatpush.msrb.mxu0 %v371_v34 }
  0x2a   : > { %357 = vmatpush.msra.mxu1 %v322_v19  ;;  %509 = vmatpush.msra.mxu2 %v371_v34 }
  0x2b   : > { %497 = vmatpush.msra.mxu3 %v322_v19  ;;  %399 = vmatpush.msrb.mxu0 %v370_v36 }
  0x2c   : > { %510 = vmatpush.msra.mxu2 %v370_v36 }
  0x2d   : > { %400 = vmatpush.msrb.mxu0 %v369_v40 }
  0x2e   : > { %511 = vmatpush.msra.mxu2 %v369_v40 }
  0x2f   : > { %401 = vmatpush.msrb.mxu0 %v368_v41 }
  0x30   : > { %512 = vmatpush.msra.mxu2 %v368_v41 }
  0x31   : > { %402 = vmatpush.msrb.mxu0 %v367_v42 }
  0x32   : > { %513 = vmatpush.msra.mxu2 %v367_v42 }
  0x8c   : > { %v314_v32 = vpop.f32.mrf.mxu0 }
  0x8d   : > { %v315_v33 = vadd.f32 %v522_v29, %v314_v32 }
  0x8f   : > { %v320_v35 = vmax.f32 %v315_v33, 0.0 }
  0x91   : > { %358 = vmatmul.f32.vlgmr.msra.gmra.mxu1 %v320_v35 }
  0x94   : > { %v317_v37 = vpop.f32.mrf.mxu0 }
  0x95   : > { %v318_v38 = vadd.f32 %v522_v29, %v317_v37 }
  0x97   : > { %v321_v39 = vmax.f32 %v318_v38, 0.0 }
  0x99   : > { %361 = vmatmul.f32.vlgmr.msra.gmra.mxu3 %v321_v39 }
 0x10e   : > { %v359_v44 = vpop.f32.mrf.mxu1 }
 0x10f   : > { %v360_v45 = vadd.f32 %v523_v43, %v359_v44 }
 0x111   : > { %v365_v46 = vmax.f32 %v360_v45, 0.0 }
 0x113   : > { %403 = vmatmul.f32.vlgmr.msrb.gmra.mxu0 %v365_v46 }
 0x11c   : > { %v362_v47 = vpop.f32.mrf.mxu3 }
 0x11d   : > { %v363_v48 = vadd.f32 %v523_v43, %v362_v47 }
 0x11f   : > { %v366_v49 = vmax.f32 %v363_v48, 0.0 }
 0x121   : > { %406 = vmatmul.f32.vlgmr.msra.gmra.mxu2 %v366_v49 }
 0x190   : > { %v404_v51 = vpop.f32.mrf.mxu0 }
 0x191   : > { %v405_v52 = vadd.f32 %v524_v50, %v404_v51 }
 0x193   : > { %411 = vst.msk [vmem:[%s280_s25] sm:$0xff] %vm410_vm1, %v405_v52 }
 0x1a4   : > { %v407_v53 = vpop.f32.mrf.mxu2 }
 0x1a5   : > { %v408_v54 = vadd.f32 %v524_v50, %v407_v53 }
 0x1a7   : > { %412 = vst.msk [vmem:[%s280_s25 + $0x8] sm:$0xff] %vm410_vm1, %v408_v54 }
 0x1a8 PF: > { %s17_s24 = sadd.s32 1, %s531_s24  }
 0x1a9   : > { %p14_p4 = scmp.ge.s32.totalorder %s17_s24, 4  }
 0x1ab   :  { %16 = sbr.rel (!%p14_p4) target bundleno = 1 (0x1), region = 78 }

</bundles_post_ra>
